<compile_context>
chip_gen: v5e
topology: v5e:2x2
jax: 0.10.0
libtpu: 0.0.40
codegen_flags: <defaults>
</compile_context>

<pallas_src>
import functools

import jax
import jax.numpy as jnp
from jax import lax
from jax.experimental import pallas as pl
from jax.experimental.pallas import tpu as pltpu

# ---- model config (consistent with the module's __init__) ----
HIDDEN = 32
NUM_HEADS = 4
NUM_KV_HEADS = 2
REP = NUM_HEADS // NUM_KV_HEADS          # query heads per kv head
HEAD_DIM = HIDDEN // NUM_HEADS           # 8  (config.head_dim not set)
HALF = HEAD_DIM // 2                     # 4
Q_SIZE = NUM_HEADS * HEAD_DIM            # 32
QH = Q_SIZE // 2                         # 16
KV_SIZE = NUM_KV_HEADS * HEAD_DIM        # 16
SCALE = HEAD_DIM ** (-0.5)
ROPE_THETA = 10000.0
SEQ = 8


# =====================================================================================
# Kernel: per-query-tile attention body (everything key/value-side is precomputed).
# =====================================================================================
def exaone_attention_kernel(hs_ref, cos_ref, sin_ref, wq_ref, wo_ref,
                            kt_ref, va_ref, ktok_ref, out_ref):
    """Shapes (T = full flattened token count):

    hs   : (tile_q, HIDDEN)        streamed query-token tile (f32 or bf16)
    cos  : (tile_q, Q_SIZE) f32    rope cos for the query rows (permuted half-split layout)
    sin  : (tile_q, Q_SIZE) f32    rope sin (sign baked in) for the query rows
    wq   : (HIDDEN, Q_SIZE) bf16   Q weight, SCALE folded, permuted columns   [resident]
    wo   : (Q_SIZE, HIDDEN) bf16   output projection                          [resident]
    kt   : (Q_SIZE, NUM_HEADS*T) bf16  block-diagonal K^T (GQA baked in)      [resident]
    va   : (NUM_HEADS*T, 2*Q_SIZE) bf16 block-diagonal [V | ones]             [resident]
    ktok : (1, NUM_HEADS*T) int32  key token index per score column           [resident]
    out  : (tile_q, HIDDEN)
    """
    f32 = jnp.float32
    bf16 = jnp.bfloat16
    i = pl.program_id(0)
    tq = hs_ref.shape[0]
    tk = ktok_ref.shape[1] // NUM_HEADS        # full key length T

    # ---- Q projection (scale pre-folded into wq) + full-width neox RoPE (f32 VPU) ----
    q = jnp.dot(hs_ref[...].astype(bf16), wq_ref[...],
                preferred_element_type=f32)                        # (tq, 32), permuted layout
    q_rot = q * cos_ref[...] + jnp.concatenate(
        [q[:, QH:], q[:, :QH]], axis=1) * sin_ref[...]

    # ---- scores for all heads in ONE MXU push: (tq, NUM_HEADS*T) ----
    s = jnp.dot(q_rot.astype(bf16), kt_ref[...], preferred_element_type=f32)

    # causal mask from the resident key-token-index row (no per-step big iotas).
    q_tok = i * tq + lax.broadcasted_iota(jnp.int32, (tq, 1), 0)
    s = jnp.where(ktok_ref[...] <= q_tok, s, -1e30)

    # ---- softmax numerator with PER-HEAD row maxima (denoms come from the PV matmul) ----
    m_full = jnp.concatenate(
        [jnp.broadcast_to(
            jnp.max(s[:, h * tk:(h + 1) * tk], axis=-1, keepdims=True), (tq, tk))
         for h in range(NUM_HEADS)],
        axis=1)                                                     # (tq, 4T)
    p = jnp.exp(s - m_full)

    # ---- PV + per-head denominators in ONE MXU push: (tq, 2*Q_SIZE) ----
    pv = jnp.dot(p.astype(bf16), va_ref[...], preferred_element_type=f32)
    # denominators >= 1 (per-head max element contributes exp(0) = 1) -> approx recip safe
    o = pv[:, :Q_SIZE] * pl.reciprocal(pv[:, Q_SIZE:], approx=True)   # (tq, 32), natural layout

    # ---- output projection ----
    out_ref[...] = jnp.dot(o.astype(bf16), wo_ref[...],
                           preferred_element_type=f32).astype(out_ref.dtype)


# =====================================================================================
# Wrapper-side (grid-invariant) precompute — plain XLA, runs once per call.
# =====================================================================================
def _rope_tables(positions):
    """Full-width (T, Q_SIZE) rope tables in half-split layout; sign baked into sin."""
    inv_freq = 1.0 / (ROPE_THETA ** (
        jnp.arange(0, HEAD_DIM, 2, dtype=jnp.float32) / HEAD_DIM))       # (HALF,)
    freqs = positions.astype(jnp.float32)[:, None] * inv_freq[None, :]   # (T, HALF)
    cos = jnp.cos(freqs)
    sin = jnp.sin(freqs)
    cos_t = jnp.tile(cos, (1, Q_SIZE // HALF))                           # (T, 32)
    sin_half = jnp.tile(sin, (1, QH // HALF))                            # (T, 16)
    sin_t = jnp.concatenate([-sin_half, sin_half], axis=1)               # (T, 32)
    return cos_t, sin_t


def _q_weight(w_qkv):
    """Q weight with SCALE folded and columns permuted into half-split layout."""
    q_cols = jnp.array(
        [h * HEAD_DIM + d for h in range(NUM_HEADS) for d in range(HALF)]
        + [h * HEAD_DIM + HALF + d for h in range(NUM_HEADS) for d in range(HALF)],
        dtype=jnp.int32)
    return (w_qkv[:, q_cols] * SCALE).astype(jnp.bfloat16)               # (HIDDEN, 32)


def _kv_side(hidden_states, w_qkv, cos_t, sin_t):
    """Hoisted K/V work: projection, K RoPE, GQA duplication, block-diagonal operands
    and the causal key-token-index row.  All grid-invariant (review item 2/3/11)."""
    T = hidden_states.shape[0]
    x = hidden_states.astype(jnp.float32)

    # K columns: duplicate each kv head REP times (virtual head h uses kv head h//REP),
    # half-split permuted layout (matches wq / rope tables).  V columns: duplicated, natural.
    k_cols = jnp.array(
        [Q_SIZE + (h // REP) * HEAD_DIM + d for h in range(NUM_HEADS) for d in range(HALF)]
        + [Q_SIZE + (h // REP) * HEAD_DIM + HALF + d
           for h in range(NUM_HEADS) for d in range(HALF)], dtype=jnp.int32)
    v_cols = jnp.array(
        [Q_SIZE + KV_SIZE + (h // REP) * HEAD_DIM + d
         for h in range(NUM_HEADS) for d in range(HEAD_DIM)], dtype=jnp.int32)

    k = x @ w_qkv[:, k_cols]                                             # (T, 32) permuted
    v = x @ w_qkv[:, v_cols]                                             # (T, 32) natural
    k_rot = k * cos_t + jnp.concatenate([k[:, QH:], k[:, :QH]], axis=1) * sin_t

    key_head = jnp.repeat(jnp.arange(NUM_HEADS, dtype=jnp.int32), T)     # (4T,)
    qcol_head = (jnp.arange(Q_SIZE, dtype=jnp.int32) % QH) // HALF       # (32,)
    # K^T block-"diagonal": column j carries key token j%T of head j//T.
    kt_bd = jnp.where(qcol_head[:, None] == key_head[None, :],
                      jnp.tile(k_rot.T, (1, NUM_HEADS)),
                      0.0).astype(jnp.bfloat16)                          # (32, 4T)

    v_aug = jnp.concatenate([v, jnp.ones_like(v)], axis=1)               # (T, 64): values | ones
    vcol_head = (jnp.arange(2 * Q_SIZE, dtype=jnp.int32) % Q_SIZE) // HEAD_DIM
    va_bd = jnp.where(key_head[:, None] == vcol_head[None, :],
                      jnp.tile(v_aug, (NUM_HEADS, 1)),
                      0.0).astype(jnp.bfloat16)                          # (4T, 64)

    k_tok = jnp.tile(jnp.arange(T, dtype=jnp.int32), NUM_HEADS)[None, :]  # (1, 4T)
    return kt_bd, va_bd, k_tok


def _default_tile_q(T):
    # Fewer grid steps amortize the ~0.35 us/step pipeline overhead, but the two f32
    # (tile_q, NUM_HEADS*T) score/prob intermediates must stay well inside scoped VMEM
    # on every chip (v7x: 64 MiB physical / 32 MiB default scoped) -> ~12 MiB budget.
    for t in (512, 256, 128, 64, 32, 16, 8):
        if T % t == 0 and 2 * t * NUM_HEADS * T * 4 <= 12 * (1 << 20):
            return t
    return 8


@functools.partial(jax.jit, static_argnames=("tile_q",))
def exaone_attention(positions, hidden_states, w_qkv, w_out, *, tile_q=None):
    T, hdim = hidden_states.shape
    assert hdim == HIDDEN and T % 8 == 0
    if tile_q is None:
        tile_q = _default_tile_q(T)
    assert T % tile_q == 0 and tile_q % 8 == 0

    cos_t, sin_t = _rope_tables(positions)
    wq = _q_weight(w_qkv)
    wo = w_out.astype(jnp.bfloat16)
    kt_bd, va_bd, k_tok = _kv_side(hidden_states, w_qkv, cos_t, sin_t)

    # bf16 halves the streamed-query DMA bytes; only used when tile_q is a multiple of
    # bf16's native 16-row packing so the windowed DMA stays aligned.  The kernel casts
    # to bf16 before the MXU either way.
    hs_in = hidden_states.astype(jnp.bfloat16) if tile_q % 16 == 0 else hidden_states

    rows = NUM_HEADS * T
    grid = (T // tile_q,)

    def resident(shape):
        # Constant-index blocks: single-buffered — no pipelining benefit for blocks that
        # never change index, and it halves their VMEM footprint (review item 7).
        return pl.BlockSpec(shape, lambda i: (0,) * len(shape),
                            pipeline_mode=pl.Buffered(1))

    in_specs = [
        pl.BlockSpec((tile_q, HIDDEN), lambda i: (i, 0)),     # hidden states (query tile)
        pl.BlockSpec((tile_q, Q_SIZE), lambda i: (i, 0)),     # cos (query rows)
        pl.BlockSpec((tile_q, Q_SIZE), lambda i: (i, 0)),     # sin (query rows)
        resident((HIDDEN, Q_SIZE)),                           # wq
        resident((Q_SIZE, HIDDEN)),                           # wo
        resident((Q_SIZE, rows)),                             # kt_bd (block-diag K^T)
        resident((rows, 2 * Q_SIZE)),                         # va_bd (block-diag [V|ones])
        resident((1, rows)),                                  # causal key-token row
    ]
    out_specs = pl.BlockSpec((tile_q, HIDDEN), lambda i: (i, 0))

    return pl.pallas_call(
        exaone_attention_kernel,
        out_shape=jax.ShapeDtypeStruct((T, HIDDEN), hidden_states.dtype),
        grid=grid,
        in_specs=in_specs,
        out_specs=out_specs,
        compiler_params=pltpu.CompilerParams(
            dimension_semantics=("parallel",)),   # query-tile axis sharded across TCs (v7x)
    )(hs_in, cos_t, sin_t, wq, wo, kt_bd, va_bd, k_tok)


# =====================================================================================
# Pure-JAX f32 reference for correctness checking.
# =====================================================================================
def exaone_attention_ref(positions, hidden_states, w_qkv, w_out):
    T = hidden_states.shape[0]
    inv_freq = 1.0 / (ROPE_THETA ** (
        jnp.arange(0, HEAD_DIM, 2, dtype=jnp.float32) / HEAD_DIM))
    freqs = positions.astype(jnp.float32)[:, None] * inv_freq[None, :]
    cos, sin = jnp.cos(freqs), jnp.sin(freqs)

    qkv = hidden_states @ w_qkv
    q = qkv[:, :Q_SIZE].reshape(T, NUM_HEADS, HEAD_DIM)
    k = qkv[:, Q_SIZE:Q_SIZE + KV_SIZE].reshape(T, NUM_KV_HEADS, HEAD_DIM)
    v = qkv[:, Q_SIZE + KV_SIZE:].reshape(T, NUM_KV_HEADS, HEAD_DIM)

    def rope(x):
        x1, x2 = x[..., :HALF], x[..., HALF:]
        c, s = cos[:, None, :], sin[:, None, :]
        return jnp.concatenate([x1 * c - x2 * s, x2 * c + x1 * s], axis=-1)

    q, k = rope(q), rope(k)
    k = jnp.repeat(k, REP, axis=1)
    v = jnp.repeat(v, REP, axis=1)
    s = jnp.einsum("qhd,khd->hqk", q, k) * SCALE
    mask = jnp.tril(jnp.ones((T, T), dtype=bool))
    s = jnp.where(mask[None], s, -1e30)
    p = jax.nn.softmax(s, axis=-1)
    o = jnp.einsum("hqk,khd->qhd", p, v).reshape(T, Q_SIZE)
    return o @ w_out


if __name__ == "__main__":
    key = jax.random.PRNGKey(0)
    k1, k2, k3, k4, k5 = jax.random.split(key, 5)

    hidden_states = jax.random.normal(k1, (SEQ, HIDDEN), dtype=jnp.float32)
    positions = jnp.arange(SEQ, dtype=jnp.int32)
    # deterministic synthetic weights (bias=False in the module)
    w_qkv = 0.05 * jax.random.normal(k2, (HIDDEN, Q_SIZE + 2 * KV_SIZE), dtype=jnp.float32)
    w_out = 0.05 * jax.random.normal(k3, (Q_SIZE, HIDDEN), dtype=jnp.float32)

    # primary (single-tile) case: seq=8, hidden=32
    out = jax.block_until_ready(exaone_attention(positions, hidden_states, w_qkv, w_out))
    ref = exaone_attention_ref(positions, hidden_states, w_qkv, w_out)
    assert out.shape == (SEQ, HIDDEN)
    # tolerance relaxed vs. pure-f32 because MXU operands are bf16 + approx reciprocal
    err = jnp.max(jnp.abs(out - ref))
    assert jnp.allclose(out, ref, rtol=2e-2, atol=7e-3), f"mismatch vs reference (max |err|={err})"

    # multi-tile grid check: 32 tokens, 4 query tiles of 8, causal across tiles, f32 stream
    T2 = 32
    hs2 = jax.random.normal(k4, (T2, HIDDEN), dtype=jnp.float32)
    pos2 = jnp.arange(T2, dtype=jnp.int32)
    out2 = jax.block_until_ready(exaone_attention(pos2, hs2, w_qkv, w_out, tile_q=8))
    ref2 = exaone_attention_ref(pos2, hs2, w_qkv, w_out)
    err2 = jnp.max(jnp.abs(out2 - ref2))
    assert jnp.allclose(out2, ref2, rtol=2e-2, atol=7e-3), f"gridded mismatch (max |err|={err2})"

    # multi-tile grid check with bf16 streamed query tiles (tile_q multiple of 16)
    T3 = 64
    hs3 = jax.random.normal(k5, (T3, HIDDEN), dtype=jnp.float32)
    pos3 = jnp.arange(T3, dtype=jnp.int32)
    out3 = jax.block_until_ready(exaone_attention(pos3, hs3, w_qkv, w_out, tile_q=16))
    ref3 = exaone_attention_ref(pos3, hs3, w_qkv, w_out)
    err3 = jnp.max(jnp.abs(out3 - ref3))
    assert jnp.allclose(out3, ref3, rtol=2e-2, atol=7e-3), f"bf16-stream mismatch (max |err|={err3})"

    print("KERNEL_OK")
</pallas_src>

<mosaic_0001>
module attributes {stable_mosaic.version = 11 : i64} {
  func.func @exaone_attention_kernel(%arg0: i32, %arg1: memref<8x32xf32, #tpu.memory_space<vmem>>, %arg2: memref<8x32xf32, #tpu.memory_space<vmem>>, %arg3: memref<8x32xf32, #tpu.memory_space<vmem>>, %arg4: memref<32x32xbf16, #tpu.memory_space<vmem>>, %arg5: memref<32x32xbf16, #tpu.memory_space<vmem>>, %arg6: memref<32x32xbf16, #tpu.memory_space<vmem>>, %arg7: memref<32x64xbf16, #tpu.memory_space<vmem>>, %arg8: memref<1x32xi32, #tpu.memory_space<vmem>>, %arg9: memref<8x32xf32, #tpu.memory_space<vmem>>) attributes {dimension_semantics = [#tpu.dimension_semantics<parallel>], iteration_bounds = array<i64: 1>, scalar_prefetch = 0 : i64, scratch_operands = 0 : i64, tpu.core_type = #tpu.core_type<tc>, window_params = [{transform_indices = @transform_0, window_bounds = array<i64: 8, 32>}, {transform_indices = @transform_1, window_bounds = array<i64: 8, 32>}, {transform_indices = @transform_2, window_bounds = array<i64: 8, 32>}, {pipeline_mode = #tpu.pipeline_mode<synchronous>, transform_indices = @transform_3, window_bounds = array<i64: 32, 32>}, {pipeline_mode = #tpu.pipeline_mode<synchronous>, transform_indices = @transform_4, window_bounds = array<i64: 32, 32>}, {pipeline_mode = #tpu.pipeline_mode<synchronous>, transform_indices = @transform_5, window_bounds = array<i64: 32, 32>}, {pipeline_mode = #tpu.pipeline_mode<synchronous>, transform_indices = @transform_6, window_bounds = array<i64: 32, 64>}, {pipeline_mode = #tpu.pipeline_mode<synchronous>, transform_indices = @transform_7, window_bounds = array<i64: 1, 32>}, {transform_indices = @transform_8, window_bounds = array<i64: 8, 32>}]} {
    %c0 = arith.constant 0 : index
    %c0_0 = arith.constant 0 : index
    %0 = vector.load %arg1[%c0, %c0_0] : memref<8x32xf32, #tpu.memory_space<vmem>>, vector<8x32xf32>
    %1 = arith.truncf %0 : vector<8x32xf32> to vector<8x32xbf16>
    %c0_1 = arith.constant 0 : index
    %c0_2 = arith.constant 0 : index
    %2 = vector.load %arg4[%c0_1, %c0_2] : memref<32x32xbf16, #tpu.memory_space<vmem>>, vector<32x32xbf16>
    %cst = arith.constant dense<0.000000e+00> : vector<8x32xf32>
    %3 = tpu.matmul %1, %2, %cst {dimension_numbers = #tpu.dot_dimension_numbers<[1], [0], [0], [1], [0, 0, 1, 1], [], []>} : vector<8x32xbf16>, vector<32x32xbf16>, vector<8x32xf32> -> vector<8x32xf32>
    %c0_3 = arith.constant 0 : index
    %c0_4 = arith.constant 0 : index
    %4 = vector.load %arg2[%c0_3, %c0_4] : memref<8x32xf32, #tpu.memory_space<vmem>>, vector<8x32xf32>
    %5 = arith.mulf %3, %4 : vector<8x32xf32>
    %6 = vector.extract_strided_slice %3 {offsets = [0, 16], sizes = [8, 16], strides = [1, 1]} : vector<8x32xf32> to vector<8x16xf32>
    %7 = vector.extract_strided_slice %3 {offsets = [0, 0], sizes = [8, 16], strides = [1, 1]} : vector<8x32xf32> to vector<8x16xf32>
    %8 = tpu.concatenate %6, %7 in 1 : vector<8x16xf32>, vector<8x16xf32> -> vector<8x32xf32>
    %c0_5 = arith.constant 0 : index
    %c0_6 = arith.constant 0 : index
    %9 = vector.load %arg3[%c0_5, %c0_6] : memref<8x32xf32, #tpu.memory_space<vmem>>, vector<8x32xf32>
    %10 = arith.mulf %8, %9 : vector<8x32xf32>
    %11 = arith.addf %5, %10 : vector<8x32xf32>
    %12 = arith.truncf %11 : vector<8x32xf32> to vector<8x32xbf16>
    %c0_7 = arith.constant 0 : index
    %c0_8 = arith.constant 0 : index
    %13 = vector.load %arg6[%c0_7, %c0_8] : memref<32x32xbf16, #tpu.memory_space<vmem>>, vector<32x32xbf16>
    %cst_9 = arith.constant dense<0.000000e+00> : vector<8x32xf32>
    %14 = tpu.matmul %12, %13, %cst_9 {dimension_numbers = #tpu.dot_dimension_numbers<[1], [0], [0], [1], [0, 0, 1, 1], [], []>} : vector<8x32xbf16>, vector<32x32xbf16>, vector<8x32xf32> -> vector<8x32xf32>
    %c8_i32 = arith.constant 8 : i32
    %15 = arith.muli %arg0, %c8_i32 : i32
    %16 = tpu.iota {dimensions = array<i32: 0>} : vector<8x1xi32>
    %17 = vector.broadcast %15 : i32 to vector<8x1xi32>
    %18 = arith.addi %17, %16 : vector<8x1xi32>
    %c0_10 = arith.constant 0 : index
    %c0_11 = arith.constant 0 : index
    %19 = vector.load %arg8[%c0_10, %c0_11] : memref<1x32xi32, #tpu.memory_space<vmem>>, vector<1x32xi32>
    %20 = vector.broadcast %19 : vector<1x32xi32> to vector<8x32xi32>
    %21 = vector.broadcast %18 : vector<8x1xi32> to vector<8x32xi32>
    %22 = arith.cmpi sle, %20, %21 : vector<8x32xi32>
    %cst_12 = arith.constant -1.000000e+30 : f32
    %23 = vector.broadcast %cst_12 : f32 to vector<8x32xf32>
    %24 = arith.select %22, %14, %23 : vector<8x32xi1>, vector<8x32xf32>
    %25 = vector.extract_strided_slice %24 {offsets = [0, 0], sizes = [8, 8], strides = [1, 1]} : vector<8x32xf32> to vector<8x8xf32>
    %cst_13 = arith.constant dense<0xFF800000> : vector<8xf32>
    %26 = vector.multi_reduction <maximumf>, %25, %cst_13 [1] : vector<8x8xf32> to vector<8xf32>
    %27 = vector.shape_cast %26 : vector<8xf32> to vector<8x1xf32>
    %28 = vector.shape_cast %27 : vector<8x1xf32> to vector<8x1xf32>
    %29 = vector.broadcast %28 : vector<8x1xf32> to vector<8x8xf32>
    %30 = vector.extract_strided_slice %24 {offsets = [0, 8], sizes = [8, 8], strides = [1, 1]} : vector<8x32xf32> to vector<8x8xf32>
    %cst_14 = arith.constant dense<0xFF800000> : vector<8xf32>
    %31 = vector.multi_reduction <maximumf>, %30, %cst_14 [1] : vector<8x8xf32> to vector<8xf32>
    %32 = vector.shape_cast %31 : vector<8xf32> to vector<8x1xf32>
    %33 = vector.shape_cast %32 : vector<8x1xf32> to vector<8x1xf32>
    %34 = vector.broadcast %33 : vector<8x1xf32> to vector<8x8xf32>
    %35 = vector.extract_strided_slice %24 {offsets = [0, 16], sizes = [8, 8], strides = [1, 1]} : vector<8x32xf32> to vector<8x8xf32>
    %cst_15 = arith.constant dense<0xFF800000> : vector<8xf32>
    %36 = vector.multi_reduction <maximumf>, %35, %cst_15 [1] : vector<8x8xf32> to vector<8xf32>
    %37 = vector.shape_cast %36 : vector<8xf32> to vector<8x1xf32>
    %38 = vector.shape_cast %37 : vector<8x1xf32> to vector<8x1xf32>
    %39 = vector.broadcast %38 : vector<8x1xf32> to vector<8x8xf32>
    %40 = vector.extract_strided_slice %24 {offsets = [0, 24], sizes = [8, 8], strides = [1, 1]} : vector<8x32xf32> to vector<8x8xf32>
    %cst_16 = arith.constant dense<0xFF800000> : vector<8xf32>
    %41 = vector.multi_reduction <maximumf>, %40, %cst_16 [1] : vector<8x8xf32> to vector<8xf32>
    %42 = vector.shape_cast %41 : vector<8xf32> to vector<8x1xf32>
    %43 = vector.shape_cast %42 : vector<8x1xf32> to vector<8x1xf32>
    %44 = vector.broadcast %43 : vector<8x1xf32> to vector<8x8xf32>
    %45 = tpu.concatenate %29, %34, %39, %44 in 1 : vector<8x8xf32>, vector<8x8xf32>, vector<8x8xf32>, vector<8x8xf32> -> vector<8x32xf32>
    %46 = arith.subf %24, %45 : vector<8x32xf32>
    %47 = math.exp %46 : vector<8x32xf32>
    %48 = arith.truncf %47 : vector<8x32xf32> to vector<8x32xbf16>
    %c0_17 = arith.constant 0 : index
    %c0_18 = arith.constant 0 : index
    %49 = vector.load %arg7[%c0_17, %c0_18] : memref<32x64xbf16, #tpu.memory_space<vmem>>, vector<32x64xbf16>
    %cst_19 = arith.constant dense<0.000000e+00> : vector<8x64xf32>
    %50 = tpu.matmul %48, %49, %cst_19 {dimension_numbers = #tpu.dot_dimension_numbers<[1], [0], [0], [1], [0, 0, 1, 1], [], []>} : vector<8x32xbf16>, vector<32x64xbf16>, vector<8x64xf32> -> vector<8x64xf32>
    %51 = vector.extract_strided_slice %50 {offsets = [0, 0], sizes = [8, 32], strides = [1, 1]} : vector<8x64xf32> to vector<8x32xf32>
    %52 = vector.extract_strided_slice %50 {offsets = [0, 32], sizes = [8, 32], strides = [1, 1]} : vector<8x64xf32> to vector<8x32xf32>
    %53 = tpu.reciprocal %52 {approx = true} : vector<8x32xf32> -> vector<8x32xf32>
    %54 = arith.mulf %51, %53 : vector<8x32xf32>
    %55 = arith.truncf %54 : vector<8x32xf32> to vector<8x32xbf16>
    %c0_20 = arith.constant 0 : index
    %c0_21 = arith.constant 0 : index
    %56 = vector.load %arg5[%c0_20, %c0_21] : memref<32x32xbf16, #tpu.memory_space<vmem>>, vector<32x32xbf16>
    %cst_22 = arith.constant dense<0.000000e+00> : vector<8x32xf32>
    %57 = tpu.matmul %55, %56, %cst_22 {dimension_numbers = #tpu.dot_dimension_numbers<[1], [0], [0], [1], [0, 0, 1, 1], [], []>} : vector<8x32xbf16>, vector<32x32xbf16>, vector<8x32xf32> -> vector<8x32xf32>
    %c0_23 = arith.constant 0 : index
    %c0_24 = arith.constant 0 : index
    %58 = vector.load %arg9[%c0_23, %c0_24] : memref<8x32xf32, #tpu.memory_space<vmem>>, vector<8x32xf32>
    tpu.vector_store %arg9[%c0_23, %c0_24], %57 {strides = array<i32>} : memref<8x32xf32, #tpu.memory_space<vmem>>, vector<8x32xf32>,
    return
  }
  func.func @transform_0(%arg0: i32) -> (i32, i32) {
    %c0_i32 = arith.constant 0 : i32
    %c0_i32_0 = arith.constant 0 : i32
    return %arg0, %c0_i32 : i32, i32
  }
  func.func @transform_1(%arg0: i32) -> (i32, i32) {
    %c0_i32 = arith.constant 0 : i32
    %c0_i32_0 = arith.constant 0 : i32
    return %arg0, %c0_i32 : i32, i32
  }
  func.func @transform_2(%arg0: i32) -> (i32, i32) {
    %c0_i32 = arith.constant 0 : i32
    %c0_i32_0 = arith.constant 0 : i32
    return %arg0, %c0_i32 : i32, i32
  }
  func.func @transform_3(%arg0: i32) -> (i32, i32) {
    %c0_i32 = arith.constant 0 : i32
    %c0_i32_0 = arith.constant 0 : i32
    %c0_i32_1 = arith.constant 0 : i32
    return %c0_i32, %c0_i32_0 : i32, i32
  }
  func.func @transform_4(%arg0: i32) -> (i32, i32) {
    %c0_i32 = arith.constant 0 : i32
    %c0_i32_0 = arith.constant 0 : i32
    %c0_i32_1 = arith.constant 0 : i32
    return %c0_i32, %c0_i32_0 : i32, i32
  }
  func.func @transform_5(%arg0: i32) -> (i32, i32) {
    %c0_i32 = arith.constant 0 : i32
    %c0_i32_0 = arith.constant 0 : i32
    %c0_i32_1 = arith.constant 0 : i32
    return %c0_i32, %c0_i32_0 : i32, i32
  }
  func.func @transform_6(%arg0: i32) -> (i32, i32) {
    %c0_i32 = arith.constant 0 : i32
    %c0_i32_0 = arith.constant 0 : i32
    %c0_i32_1 = arith.constant 0 : i32
    return %c0_i32, %c0_i32_0 : i32, i32
  }
  func.func @transform_7(%arg0: i32) -> (i32, i32) {
    %c0_i32 = arith.constant 0 : i32
    %c0_i32_0 = arith.constant 0 : i32
    %c0_i32_1 = arith.constant 0 : i32
    return %c0_i32, %c0_i32_0 : i32, i32
  }
  func.func @transform_8(%arg0: i32) -> (i32, i32) {
    %c0_i32 = arith.constant 0 : i32
    %c0_i32_0 = arith.constant 0 : i32
    return %arg0, %c0_i32 : i32, i32
  }
}

</mosaic_0001>

<bundles_post_ra>
// kernel: neg.1
= control target key start
LH: loop header
LB: loop body
LE: loop exit
PB: predicated region body
PF: predicated region fallthrough
CT: control target
= control target key end

     0   :  { %s24_s0 = inlined_call_operand.vmem [shape: f32[8,16], index: 0, kind: input, shape index: {}]   ;;  %s25_s1 = inlined_call_operand.vmem [shape: f32[8,16], index: 1, kind: output, shape index: {}]  }
   0x1   :  { %v2_v0 = vld [vmem:[%s24_s0] sm:$0xff] }
   0x2   :  { %v5_v1 = vxor.u32 2147483648, %v2_v0 }
   0x4   :  { %7 = vst [vmem:[%s25_s1] sm:$0xff] %v5_v1 }

// kernel: eq.22
= control target key start
LH: loop header
LB: loop body
LE: loop exit
PB: predicated region body
PF: predicated region fallthrough
CT: control target
= control target key end

     0   :  { %s37_s8 = smov 8   ;;  %s38_s9 = smov 16   ;;  %vm7_vm0 = vcmask 64512   ;;  %vm13_vm1 = vcmask 261312   ;;  %vm19_vm2 = vcmask 195712   ;;  %vm25_vm3 = vcmask 130112   ;;  %s55_s0 = inlined_call_operand.vmem [shape: s32[4,8], index: 0, kind: input, shape index: {}]   ;;  %s56_s1 = inlined_call_operand.vmem [shape: s32[32], index: 1, kind: output, shape index: {}]  }
   0x1   :  { %v4_v0 = vld [vmem:[%s55_s0] sm:$0xf]  ;;  %s36_s0 = smov 24  }
   0x2   :  { %5 = vst [vmem:[#allocation1] sm:$0xf] %v4_v0 }
   0x9   :  { %v10_v1 = vld [vmem:[#allocation1 + $0x3] sm:$0x1]   ;;  %v22_v2 = vld [vmem:[#allocation1 + $0x1] sm:$0x1]   ;;  %v16_v3 = vld [vmem:[#allocation1 + $0x2] sm:$0x1]  }
   0xa   :  { %11 = vrot.lane.b32.xlu0 %v10_v1, %s36_s0  ;;  %23 = vrot.lane.b32.xlu1 %v22_v2, %s37_s8  ;;  %v6_v4 = vld [vmem:[#allocation1] sm:$0x1]  }
   0xb   :  { %8 = vst.msk [vmem:[#allocation0] sm:$0x1] %vm7_vm0, %v6_v4  }
  0x12   :  { %17 = vrot.lane.b32.xlu0 %v16_v3, %s38_s9 }
  0x7c   :  { %v12_v5 = vpop.permute.xlu0 %11   ;;  %v24_v6 = vpop.permute.xlu1 %23  }
  0x7d   :  { %14 = vst.msk [vmem:[#allocation0] sm:$0x1] %vm13_vm1, %v12_v5  }
  0x84   :  { %v18_v7 = vpop.permute.xlu0 %17  }
  0x85   :  { %20 = vst.msk [vmem:[#allocation0] sm:$0x1] %vm19_vm2, %v18_v7  }
  0x86   :  { %26 = vst.msk [vmem:[#allocation0] sm:$0x1] %vm25_vm3, %v24_v6  }
  0x8d   :  { %v29_v8 = vld [vmem:[#allocation0] sm:$0x1] }
  0x8e   :  { %32 = vst [vmem:[%s56_s1] sm:$0x1] %v29_v8 }

// kernel: tile.49
= control target key start
LH: loop header
LB: loop body
LE: loop exit
PB: predicated region body
PF: predicated region fallthrough
CT: control target
= control target key end

     0   :  { %s37_s8 = smov 8   ;;  %s38_s9 = smov 16   ;;  %vm7_vm0 = vcmask 64512   ;;  %vm13_vm1 = vcmask 261312   ;;  %vm19_vm2 = vcmask 195712   ;;  %vm25_vm3 = vcmask 130112   ;;  %s55_s0 = inlined_call_operand.vmem [shape: s32[4,8], index: 0, kind: input, shape index: {}]   ;;  %s56_s1 = inlined_call_operand.vmem [shape: s32[1,32], index: 1, kind: output, shape index: {}]  }
   0x1   :  { %v4_v0 = vld [vmem:[%s55_s0] sm:$0xf]  ;;  %s36_s0 = smov 24  }
   0x2   :  { %5 = vst [vmem:[#allocation1] sm:$0xf] %v4_v0 }
   0x9   :  { %v10_v1 = vld [vmem:[#allocation1 + $0x3] sm:$0x1]   ;;  %v22_v2 = vld [vmem:[#allocation1 + $0x1] sm:$0x1]   ;;  %v16_v3 = vld [vmem:[#allocation1 + $0x2] sm:$0x1]  }
   0xa   :  { %11 = vrot.lane.b32.xlu0 %v10_v1, %s36_s0  ;;  %23 = vrot.lane.b32.xlu1 %v22_v2, %s37_s8  ;;  %v6_v4 = vld [vmem:[#allocation1] sm:$0x1]  }
   0xb   :  { %8 = vst.msk [vmem:[#allocation0] sm:$0x1] %vm7_vm0, %v6_v4  }
  0x12   :  { %17 = vrot.lane.b32.xlu0 %v16_v3, %s38_s9 }
  0x7c   :  { %v12_v5 = vpop.permute.xlu0 %11   ;;  %v24_v6 = vpop.permute.xlu1 %23  }
  0x7d   :  { %14 = vst.msk [vmem:[#allocation0] sm:$0x1] %vm13_vm1, %v12_v5  }
  0x84   :  { %v18_v7 = vpop.permute.xlu0 %17  }
  0x85   :  { %20 = vst.msk [vmem:[#allocation0] sm:$0x1] %vm19_vm2, %v18_v7  }
  0x86   :  { %26 = vst.msk [vmem:[#allocation0] sm:$0x1] %vm25_vm3, %v24_v6  }
  0x8d   :  { %v29_v8 = vld [vmem:[#allocation0] sm:$0x1] }
  0x8e   :  { %32 = vst [vmem:[%s56_s1] sm:$0x1] %v29_v8 }

// kernel: exaone_attention.1
= control target key start
LH: loop header
LB: loop body
LE: loop exit
PB: predicated region body
PF: predicated region fallthrough
CT: control target
= control target key end

     0   :  { %s410_s0 = inlined_call_operand.vmem [shape: f32[8,32], index: 0, kind: input, shape index: {}]   ;;  %s411_s1 = inlined_call_operand.vmem [shape: f32[8,32], index: 1, kind: input, shape index: {}]   ;;  %s412_s2 = inlined_call_operand.vmem [shape: f32[8,32], index: 2, kind: input, shape index: {}]   ;;  %s413_s3 = inlined_call_operand.vmem [shape: bf16[32,32], index: 3, kind: input, shape index: {}]   ;;  %s414_s4 = inlined_call_operand.vmem [shape: bf16[32,32], index: 4, kind: input, shape index: {}]   ;;  %s415_s5 = inlined_call_operand.vmem [shape: bf16[32,32], index: 5, kind: input, shape index: {}]   ;;  %s416_s6 = inlined_call_operand.vmem [shape: bf16[32,64], index: 6, kind: input, shape index: {}]   ;;  %s417_s7 = inlined_call_operand.vmem [shape: s32[1,32], index: 7, kind: input, shape index: {}]   ;;  %s418_s8 = inlined_call_operand.hbm [shape: f32[8,32], index: 8, kind: output, shape index: {}]  }
   0x1   :  { %v271_v0 = vld [vmem:[%s413_s3 + $0x8] sm:$0xff] }
   0x2   :  { %13 = vsyncpa [#allocation3], 0  ;;  %59 = vmatpush.bf16.msra.mxu0 %v271_v0  ;;  %v270_v1 = vld [vmem:[%s413_s3] sm:$0xff]  ;;  %vm49_vm0 = vcmask 261120   ;;  %s313_s11 = smov 112   ;;  %s314_s12 = smov 16   ;;  %v114_v17 = vlaneseq }
   0x3   :  { %v31_v2 = vld [vmem:[%s410_s0] sm:$0xff]  ;;  %v273_v6 = vld [vmem:[%s415_s5 + $0x8] sm:$0xff]  ;;  %vm75_vm1 = vcmask 130048   ;;  %vm130_vm3 = vcmask 195712   ;;  %vm122_vm4 = vcmask 64512   ;;  %vm134_vm5 = vcmask 261312  }
   0x4   :  { %v32_v3 = vpack.c.bf16 %v31_v2, %v31_v2  ;;  %106 = vmatpush.bf16.msra.mxu1 %v273_v6  ;;  %v272_v7 = vld [vmem:[%s415_s5] sm:$0xff]  ;;  %v115_v18 = vshrl.u32 %v114_v17, 7  ;;  %vm126_vm6 = vcmask 130112   ;;  %v275_v27 = vld [vmem:[%s416_s6 + $0x8] sm:$0xff]  ;;  %vm140_vm7 = vcmask 195584   ;;  %s315_s22 = smov 96  }
   0x5   :  { %v66_v9 = vld [vmem:[%s411_s1] sm:$0xff]  ;;  %171 = vmatpush.bf16.msra.mxu2 %v275_v27  ;;  %v277_v40 = vld [vmem:[%s414_s4 + $0x8] sm:$0xff]  ;;  %s316_s25 = smov [#allocation2]   ;;  %s225_s29 = sshll.u32 %s418_s8, 4  ;;  %s226_s29 = int_to_ptr.hbm [resolvable:$true] %s225_s29 }
   0x6   :  { %60 = vmatpush.bf16.msra.mxu0 %v270_v1  ;;  %v77_v10 = vld [vmem:[%s412_s2] sm:$0xff]  ;;  %210 = vmatpush.bf16.msra.mxu3 %v277_v40  ;;  %s223_s26 = sshll.u32 %s316_s25, 4  ;;  %s224_s26 = int_to_ptr.vmem [resolvable:$true] %s223_s26 }
   0x7   :  { %v282_v19 = vld [vmem:[%s417_s7] ss:$0 sm:$0xff] }
   0x8   :  { %107 = vmatpush.bf16.msra.mxu1 %v272_v7  ;;  %vm120_vm2 = vcmp.le.s32.totalorder %v282_v19, %v115_v18  ;;  %v274_v28 = vld [vmem:[%s416_s6] sm:$0xff] }
   0x9   :  { %242 = vmatmul.msk.bf16.vlgmr.msra.gmra.mxu0 %vm49_vm0, %v32_v3  ;;  %172 = vmatpush.bf16.msra.mxu2 %v274_v28  ;;  %v276_v44 = vld [vmem:[%s414_s4] sm:$0xff] }
   0xa   :  { %211 = vmatpush.bf16.msra.mxu3 %v276_v44 }
  0x86   :  { %v62_v4 = vpop.f32.mrf.mxu0 }
  0x87   :  { %69 = vrot.lane.b32.xlu0 %v62_v4, %s313_s11  ;;  %v67_v13 = vmul.f32 %v66_v9, %v62_v4 }
  0x8e   :  { %v64_v5 = vpop.f32.mrf.mxu0 }
  0x8f   :  { %72 = vrot.lane.b32.xlu0 %v62_v4, %s314_s12 }
  0xf9   :  { %v70_v8 = vpop.permute.xlu0 %69 }
 0x101   :  { %v73_v11 = vpop.permute.xlu0 %72 }
 0x102   :  { %v76_v12 = vsel %vm75_vm1, %v70_v8, %v73_v11 }
 0x103   :  { %v78_v14 = vmul.f32 %v77_v10, %v76_v12 }
 0x105   :  { %v79_v15 = vadd.f32 %v78_v14, %v67_v13 }
 0x107   :  { %v80_v16 = vpack.c.bf16 %v79_v15, %v79_v15 }
 0x109   :  { %251 = vmatmul.msk.bf16.vlgmr.msra.gmra.mxu1 %vm49_vm0, %v80_v16 }
 0x186   :  { %v109_v20 = vpop.f32.mrf.mxu1 }
 0x187   :  { %v121_v21 = vsel %vm120_vm2, %v109_v20, -1e+30 }
 0x188   :  { %v131_v22 = vsel %vm130_vm3, %v121_v21, -inf  ;;  %v123_v23 = vsel %vm122_vm4, %v121_v21, -inf  ;;  %v135_v25 = vsel %vm134_vm5, %v121_v21, -inf  ;;  %v127_v26 = vsel %vm126_vm6, %v121_v21, -inf }
 0x189   :  { %132 = vmax.xlane.f32.xlu2 %v131_v22  ;;  %124 = vmax.xlane.f32.xlu1 %v123_v23 }
 0x18e   :  { %v111_v24 = vpop.f32.mrf.mxu1 }
 0x191   :  { %136 = vmax.xlane.f32.xlu2 %v135_v25  ;;  %128 = vmax.xlane.f32.xlu1 %v127_v26 }
 0x1fc   :  { %v133_v29 = vpop.xlane.xlu2 %132  ;;  %v125_v30 = vpop.xlane.xlu1 %124 }
 0x204   :  { %v129_v31 = vpop.xlane.xlu1 %128  ;;  %v137_v33 = vpop.xlane.xlu2 %136 }
 0x205   :  { %v138_v32 = vsel %vm122_vm4, %v125_v30, %v129_v31 }
 0x206   :  { %v139_v34 = vsel %vm75_vm1, %v138_v32, %v133_v29 }
 0x207   :  { %v141_v35 = vsel %vm140_vm7, %v139_v34, %v137_v33 }
 0x208   :  { %v142_v36 = vsub.f32 %v121_v21, %v141_v35 }
 0x20a   :  { %v143_v37 = vmul.f32 1.442695, %v142_v36 }
 0x20c   :  { %283 = vpow2.f32 %v143_v37 }
 0x212   :  { %v284_v38 = vpop.eup %283 }
 0x213   :  { %v145_v39 = vpack.c.bf16 %v284_v38, %v284_v38 }
 0x215   :  { %260 = vmatmul.msk.bf16.vlgmr.msra.gmra.mxu2 %vm49_vm0, %v145_v39 }
 0x298   :  { %v174_v41 = vpop.f32.mrf.mxu2 }
 0x299   :  { %285 = vrcp.f32 %v174_v41 }
 0x29f   :  { %v286_v42 = vpop.eup %285 }
 0x2a0   :  { %180 = vrot.lane.b32.xlu0 %v286_v42, %s315_s22  ;;  %v176_v43 = vpop.f32.mrf.mxu2 }
 0x312   :  { %v181_v45 = vpop.permute.xlu0 %180 }
 0x313   :  { %v183_v46 = vmul.f32 %v181_v45, %v174_v41 }
 0x315   :  { %v184_v47 = vpack.c.bf16 %v183_v46, %v183_v46 }
 0x317   :  { %269 = vmatmul.msk.bf16.vlgmr.msra.gmra.mxu3 %vm49_vm0, %v184_v47 }
 0x39a   :  { %v213_v48 = vpop.f32.mrf.mxu3 }
 0x39b   :  { %217 = vst.msk [vmem:[#allocation2] sm:$0xff] %vm49_vm0, %v213_v48 }
 0x39c   :  { %228 = dma.vmem_to_hbm [thread:$0]  %s224_s26, 128, %s226_s29, [#allocation3]  }
 0x3a2   :  { %v215_v49 = vpop.f32.mrf.mxu3 }
 0x3a3   :  { %311 = dma.done.wait [#allocation3], 128  }
 0x3a4   :  { %312 = vsyncadd [#allocation3], 4294967168 }
 0x3a5   :  { %233 = vsyncpa [#allocation3], 1 }

</bundles_post_ra>
